<compile_context>
chip_gen: v7x
topology: tpu7x:2x2x1
jax: 0.10.0
libtpu: 0.0.40
codegen_flags: <defaults>
</compile_context>

<pallas_src>
import functools

import jax
import jax.numpy as jnp
from jax import lax
from jax.experimental import pallas as pl
from jax.experimental.pallas import tpu as pltpu

EPS = 1e-6          # CosineSimilarity(dim=1, eps=1e-06)
EPS_SQ = EPS * EPS  # clamp applied on squared norms (== clamping the norm)
STATS_LANES = 128   # lane-dense stats output: lane0 = cosine, lane1 = (cos-label)^2


def _round_up(x, m):
    return ((x + m - 1) // m) * m


# ---------------------------------------------------------------------------
# Fused kernel: [support | query] @ W  (K-tiled, f32 accumulators) followed
# by cosine-similarity + per-row squared error in the epilogue of the last
# K step.  Grid = (m_tiles, k_tiles); m is "parallel", k is "arbitrary".
# ---------------------------------------------------------------------------
def _fused_kernel(s_ref, q_ref, w_ref, label_ref,      # inputs
                  s_out, q_out, stats_out,             # outputs
                  acc_s, acc_q):                       # scratch
    k = pl.program_id(1)
    nk = pl.num_programs(1)

    @pl.when(k == 0)
    def _init():
        acc_s[...] = jnp.zeros_like(acc_s)
        acc_q[...] = jnp.zeros_like(acc_q)

    w = w_ref[...]                                    # (tk, D_pad) bf16, loaded once
    acc_s[...] += jnp.dot(s_ref[...], w, preferred_element_type=jnp.float32)
    acc_q[...] += jnp.dot(q_ref[...], w, preferred_element_type=jnp.float32)

    @pl.when(k == nk - 1)
    def _epilogue():
        s = acc_s[...]                                # (tm, D_pad) f32
        q = acc_q[...]
        s_out[...] = s
        q_out[...] = q

        dot = jnp.sum(q * s, axis=-1, keepdims=True)  # (tm, 1)  XLU reductions
        ss = jnp.sum(s * s, axis=-1, keepdims=True)
        qq = jnp.sum(q * q, axis=-1, keepdims=True)
        # PyTorch CosineSimilarity: dot / (max(||s||,eps) * max(||q||,eps))
        #   == dot * rsqrt(max(ss, eps^2) * max(qq, eps^2))   (single EUP rsqrt)
        inv = lax.rsqrt(jnp.maximum(ss, EPS_SQ) * jnp.maximum(qq, EPS_SQ))
        cos = dot * inv                               # (tm, 1)

        diff = cos - label_ref[...]                   # (tm, 1)
        sqerr = diff * diff

        # Fold score + squared-error into one lane-dense (tm, 128) store.
        lane = lax.broadcasted_iota(jnp.int32, stats_out.shape, 1)
        stats_out[...] = jnp.where(lane == 0, cos,
                                   jnp.where(lane == 1, sqerr, 0.0))


@functools.partial(jax.jit, static_argnames=("tm", "tk"))
def fused_features_and_score(support_img, query_img, label, w, *, tm=128, tk=512):
    """Returns (s_feat [N,D] f32, q_feat [N,D] f32, score [N] f32, mse scalar)."""
    n = support_img.shape[0]
    k_dim = support_img.shape[1] * support_img.shape[2] * support_img.shape[3]
    d = w.shape[1]

    s_flat = support_img.reshape(n, k_dim)
    q_flat = query_img.reshape(n, k_dim)

    # --- pad to TPU-friendly tile multiples (zero padding is exact) ---------
    m_pad = _round_up(n, 8)
    tm_eff = min(tm, m_pad)
    m_pad = _round_up(m_pad, tm_eff)

    k_pad = _round_up(k_dim, 128)
    tk_eff = min(tk, k_pad)
    k_pad = _round_up(k_pad, tk_eff)

    d_pad = _round_up(d, 128)

    def pad2(x, rows, cols):
        return jnp.pad(x, ((0, rows - x.shape[0]), (0, cols - x.shape[1])))

    # bf16 MXU inputs, f32 accumulation inside the kernel.
    s_p = pad2(s_flat, m_pad, k_pad).astype(jnp.bfloat16)
    q_p = pad2(q_flat, m_pad, k_pad).astype(jnp.bfloat16)
    w_p = pad2(w, k_pad, d_pad).astype(jnp.bfloat16)
    label_p = jnp.pad(label.astype(jnp.float32).reshape(n, 1),
                      ((0, m_pad - n), (0, 0)))

    grid = (m_pad // tm_eff, k_pad // tk_eff)

    flops = 2 * 2 * m_pad * k_pad * d_pad + 8 * m_pad * d_pad
    bytes_accessed = ((2 * m_pad * k_pad + k_pad * d_pad) * 2   # bf16 inputs
                      + m_pad * 4                               # label
                      + (2 * m_pad * d_pad + m_pad * STATS_LANES) * 4)
    cost = pl.CostEstimate(flops=flops, transcendentals=m_pad,
                           bytes_accessed=bytes_accessed)

    s_feat_p, q_feat_p, stats_p = pl.pallas_call(
        _fused_kernel,
        out_shape=(
            jax.ShapeDtypeStruct((m_pad, d_pad), jnp.float32),
            jax.ShapeDtypeStruct((m_pad, d_pad), jnp.float32),
            jax.ShapeDtypeStruct((m_pad, STATS_LANES), jnp.float32),
        ),
        grid_spec=pltpu.PrefetchScalarGridSpec(
            num_scalar_prefetch=0,
            grid=grid,
            in_specs=[
                pl.BlockSpec((tm_eff, tk_eff), lambda m, k: (m, k)),   # support
                pl.BlockSpec((tm_eff, tk_eff), lambda m, k: (m, k)),   # query
                pl.BlockSpec((tk_eff, d_pad), lambda m, k: (k, 0)),    # weights
                pl.BlockSpec((tm_eff, 1), lambda m, k: (m, 0)),        # label
            ],
            out_specs=(
                pl.BlockSpec((tm_eff, d_pad), lambda m, k: (m, 0)),    # s_feat
                pl.BlockSpec((tm_eff, d_pad), lambda m, k: (m, 0)),    # q_feat
                pl.BlockSpec((tm_eff, STATS_LANES), lambda m, k: (m, 0)),
            ),
            scratch_shapes=[
                pltpu.VMEM((tm_eff, d_pad), jnp.float32),
                pltpu.VMEM((tm_eff, d_pad), jnp.float32),
            ],
        ),
        compiler_params=pltpu.CompilerParams(
            dimension_semantics=("parallel", "arbitrary"),
            vmem_limit_bytes=32 * 1024 * 1024,
        ),
        cost_estimate=cost,
    )(s_p, q_p, w_p, label_p)

    s_feat = s_feat_p[:n, :d]
    q_feat = q_feat_p[:n, :d]
    score = stats_p[:n, 0]
    # Global mean across M tiles is finished outside the kernel because the
    # m grid axis is "parallel" (cross-tile accumulation would serialize it).
    mse = jnp.sum(stats_p[:n, 1]) / n
    return s_feat, q_feat, score, mse


# ---------------------------------------------------------------------------
# ModelTemplate-shaped API (extract_features + get_loss_or_score), backed by
# the single fused kernel above.
# ---------------------------------------------------------------------------
def model_forward(support_img, query_img, label, w, split, n_shot=1):
    assert split in ("train", "test", "eval")
    s_feat, q_feat, score, mse = fused_features_and_score(
        support_img, query_img, label, w)
    if split == "train":
        return mse
    if n_shot > 1:
        # TODO(synk): the fused score/MSE epilogue still runs here (it is ~free);
        # a features-only kernel variant could skip it entirely.
        return s_feat, q_feat
    return score


# ---------------------------------------------------------------------------
# Driver
# ---------------------------------------------------------------------------
if __name__ == "__main__":
    key = jax.random.PRNGKey(0)
    k1, k2, k3, k4 = jax.random.split(key, 4)

    # Small shapes: batch=8, channels=4, spatial=16x16.
    # Stand-in embedding dim 128 (lane-aligned; real backbones use 384/640/2048).
    N, C, H, W = 8, 4, 16, 16
    D = 128

    support_img = jax.random.normal(k1, (N, C, H, W), dtype=jnp.float32)
    query_img = jax.random.normal(k2, (N, C, H, W), dtype=jnp.float32)
    label = jax.random.uniform(k3, (N,), dtype=jnp.float32)
    w_feat = jax.random.normal(k4, (C * H * W, D), dtype=jnp.float32) * 0.02

    # Single fused kernel launch; both the train-path loss and the eval-path
    # score come out of the same call (no redundant second kernel execution).
    s_feat, q_feat, score, mse = fused_features_and_score(
        support_img, query_img, label, w_feat)
    jax.block_until_ready((s_feat, q_feat, score, mse))

    loss = mse          # == model_forward(..., split="train")
    eval_score = score  # == model_forward(..., split="eval", n_shot=1)

    # ----- plain-JAX reference (same bf16 matmul path, PyTorch eps rule) -----
    flat_s = support_img.reshape(N, -1).astype(jnp.bfloat16)
    flat_q = query_img.reshape(N, -1).astype(jnp.bfloat16)
    wb = w_feat.astype(jnp.bfloat16)
    ref_s = jnp.dot(flat_s, wb, preferred_element_type=jnp.float32)
    ref_q = jnp.dot(flat_q, wb, preferred_element_type=jnp.float32)
    num = jnp.sum(ref_q * ref_s, axis=1)
    den = (jnp.maximum(jnp.linalg.norm(ref_s, axis=1), EPS) *
           jnp.maximum(jnp.linalg.norm(ref_q, axis=1), EPS))
    ref_score = num / den
    ref_mse = jnp.mean((ref_score - label) ** 2)

    assert jnp.allclose(s_feat, ref_s, atol=1e-4, rtol=1e-4)
    assert jnp.allclose(q_feat, ref_q, atol=1e-4, rtol=1e-4)
    assert jnp.allclose(eval_score, ref_score, atol=1e-4, rtol=1e-4)
    assert jnp.allclose(loss, ref_mse, atol=1e-4, rtol=1e-4)

    print("KERNEL_OK")
</pallas_src>

<mosaic_0001>
module attributes {stable_mosaic.version = 11 : i64} {
  func.func @_fused_kernel(%arg0: i32, %arg1: i32, %arg2: memref<8x512xbf16, #tpu.memory_space<vmem>>, %arg3: memref<8x512xbf16, #tpu.memory_space<vmem>>, %arg4: memref<512x128xbf16, #tpu.memory_space<vmem>>, %arg5: memref<8x1xf32, #tpu.memory_space<vmem>>, %arg6: memref<8x128xf32, #tpu.memory_space<vmem>>, %arg7: memref<8x128xf32, #tpu.memory_space<vmem>>, %arg8: memref<8x128xf32, #tpu.memory_space<vmem>>, %arg9: memref<8x128xf32, #tpu.memory_space<vmem>>, %arg10: memref<8x128xf32, #tpu.memory_space<vmem>>) attributes {dimension_semantics = [#tpu.dimension_semantics<parallel>, #tpu.dimension_semantics<arbitrary>], iteration_bounds = array<i64: 1, 2>, scalar_prefetch = 0 : i64, scratch_operands = 2 : i64, tpu.core_type = #tpu.core_type<tc>, window_params = [{transform_indices = @transform_0, window_bounds = array<i64: 8, 512>}, {transform_indices = @transform_1, window_bounds = array<i64: 8, 512>}, {transform_indices = @transform_2, window_bounds = array<i64: 512, 128>}, {transform_indices = @transform_3, window_bounds = array<i64: 8, 1>}, {transform_indices = @transform_4, window_bounds = array<i64: 8, 128>}, {transform_indices = @transform_5, window_bounds = array<i64: 8, 128>}, {transform_indices = @transform_6, window_bounds = array<i64: 8, 128>}]} {
    %c0_i32 = arith.constant 0 : i32
    %0 = arith.cmpi eq, %arg1, %c0_i32 : i32
    %1 = arith.extui %0 : i1 to i32
    %c0_i32_0 = arith.constant 0 : i32
    %2 = arith.cmpi ne, %1, %c0_i32_0 : i32
    scf.if %2 {
      %cst_16 = arith.constant 0.000000e+00 : f32
      %17 = vector.broadcast %cst_16 : f32 to vector<8x128xf32>
      %c0_17 = arith.constant 0 : index
      %c0_18 = arith.constant 0 : index
      %18 = vector.load %arg9[%c0_17, %c0_18] : memref<8x128xf32, #tpu.memory_space<vmem>>, vector<8x128xf32>
      tpu.vector_store %arg9[%c0_17, %c0_18], %17 {strides = array<i32>} : memref<8x128xf32, #tpu.memory_space<vmem>>, vector<8x128xf32>,
      %cst_19 = arith.constant 0.000000e+00 : f32
      %19 = vector.broadcast %cst_19 : f32 to vector<8x128xf32>
      %c0_20 = arith.constant 0 : index
      %c0_21 = arith.constant 0 : index
      %20 = vector.load %arg10[%c0_20, %c0_21] : memref<8x128xf32, #tpu.memory_space<vmem>>, vector<8x128xf32>
      tpu.vector_store %arg10[%c0_20, %c0_21], %19 {strides = array<i32>} : memref<8x128xf32, #tpu.memory_space<vmem>>, vector<8x128xf32>,
    } else {
    }
    %c0 = arith.constant 0 : index
    %c0_1 = arith.constant 0 : index
    %3 = vector.load %arg4[%c0, %c0_1] : memref<512x128xbf16, #tpu.memory_space<vmem>>, vector<512x128xbf16>
    %c0_2 = arith.constant 0 : index
    %c0_3 = arith.constant 0 : index
    %4 = vector.load %arg9[%c0_2, %c0_3] : memref<8x128xf32, #tpu.memory_space<vmem>>, vector<8x128xf32>
    %c0_4 = arith.constant 0 : index
    %c0_5 = arith.constant 0 : index
    %5 = vector.load %arg2[%c0_4, %c0_5] : memref<8x512xbf16, #tpu.memory_space<vmem>>, vector<8x512xbf16>
    %cst = arith.constant dense<0.000000e+00> : vector<8x128xf32>
    %6 = tpu.matmul %5, %3, %cst {dimension_numbers = #tpu.dot_dimension_numbers<[1], [0], [0], [1], [0, 0, 1, 1], [], []>} : vector<8x512xbf16>, vector<512x128xbf16>, vector<8x128xf32> -> vector<8x128xf32>
    %7 = arith.addf %4, %6 : vector<8x128xf32>
    %c0_6 = arith.constant 0 : index
    %c0_7 = arith.constant 0 : index
    %8 = vector.load %arg9[%c0_6, %c0_7] : memref<8x128xf32, #tpu.memory_space<vmem>>, vector<8x128xf32>
    tpu.vector_store %arg9[%c0_6, %c0_7], %7 {strides = array<i32>} : memref<8x128xf32, #tpu.memory_space<vmem>>, vector<8x128xf32>,
    %c0_8 = arith.constant 0 : index
    %c0_9 = arith.constant 0 : index
    %9 = vector.load %arg10[%c0_8, %c0_9] : memref<8x128xf32, #tpu.memory_space<vmem>>, vector<8x128xf32>
    %c0_10 = arith.constant 0 : index
    %c0_11 = arith.constant 0 : index
    %10 = vector.load %arg3[%c0_10, %c0_11] : memref<8x512xbf16, #tpu.memory_space<vmem>>, vector<8x512xbf16>
    %cst_12 = arith.constant dense<0.000000e+00> : vector<8x128xf32>
    %11 = tpu.matmul %10, %3, %cst_12 {dimension_numbers = #tpu.dot_dimension_numbers<[1], [0], [0], [1], [0, 0, 1, 1], [], []>} : vector<8x512xbf16>, vector<512x128xbf16>, vector<8x128xf32> -> vector<8x128xf32>
    %12 = arith.addf %9, %11 : vector<8x128xf32>
    %c0_13 = arith.constant 0 : index
    %c0_14 = arith.constant 0 : index
    %13 = vector.load %arg10[%c0_13, %c0_14] : memref<8x128xf32, #tpu.memory_space<vmem>>, vector<8x128xf32>
    tpu.vector_store %arg10[%c0_13, %c0_14], %12 {strides = array<i32>} : memref<8x128xf32, #tpu.memory_space<vmem>>, vector<8x128xf32>,
    %c1_i32 = arith.constant 1 : i32
    %14 = arith.cmpi eq, %arg1, %c1_i32 : i32
    %15 = arith.extui %14 : i1 to i32
    %c0_i32_15 = arith.constant 0 : i32
    %16 = arith.cmpi ne, %15, %c0_i32_15 : i32
    scf.if %16 {
      %c0_16 = arith.constant 0 : index
      %c0_17 = arith.constant 0 : index
      %17 = vector.load %arg9[%c0_16, %c0_17] : memref<8x128xf32, #tpu.memory_space<vmem>>, vector<8x128xf32>
      %c0_18 = arith.constant 0 : index
      %c0_19 = arith.constant 0 : index
      %18 = vector.load %arg10[%c0_18, %c0_19] : memref<8x128xf32, #tpu.memory_space<vmem>>, vector<8x128xf32>
      %c0_20 = arith.constant 0 : index
      %c0_21 = arith.constant 0 : index
      %19 = vector.load %arg6[%c0_20, %c0_21] : memref<8x128xf32, #tpu.memory_space<vmem>>, vector<8x128xf32>
      tpu.vector_store %arg6[%c0_20, %c0_21], %17 {strides = array<i32>} : memref<8x128xf32, #tpu.memory_space<vmem>>, vector<8x128xf32>,
      %c0_22 = arith.constant 0 : index
      %c0_23 = arith.constant 0 : index
      %20 = vector.load %arg7[%c0_22, %c0_23] : memref<8x128xf32, #tpu.memory_space<vmem>>, vector<8x128xf32>
      tpu.vector_store %arg7[%c0_22, %c0_23], %18 {strides = array<i32>} : memref<8x128xf32, #tpu.memory_space<vmem>>, vector<8x128xf32>,
      %21 = arith.mulf %18, %17 : vector<8x128xf32>
      %cst_24 = arith.constant dense<0.000000e+00> : vector<8xf32>
      %22 = vector.multi_reduction <add>, %21, %cst_24 [1] : vector<8x128xf32> to vector<8xf32>
      %23 = vector.shape_cast %22 : vector<8xf32> to vector<8x1xf32>
      %24 = arith.mulf %17, %17 : vector<8x128xf32>
      %cst_25 = arith.constant dense<0.000000e+00> : vector<8xf32>
      %25 = vector.multi_reduction <add>, %24, %cst_25 [1] : vector<8x128xf32> to vector<8xf32>
      %26 = vector.shape_cast %25 : vector<8xf32> to vector<8x1xf32>
      %27 = arith.mulf %18, %18 : vector<8x128xf32>
      %cst_26 = arith.constant dense<0.000000e+00> : vector<8xf32>
      %28 = vector.multi_reduction <add>, %27, %cst_26 [1] : vector<8x128xf32> to vector<8xf32>
      %29 = vector.shape_cast %28 : vector<8xf32> to vector<8x1xf32>
      %cst_27 = arith.constant 9.99999996E-13 : f32
      %30 = vector.broadcast %cst_27 : f32 to vector<8x1xf32>
      %31 = arith.maximumf %26, %30 : vector<8x1xf32>
      %cst_28 = arith.constant 9.99999996E-13 : f32
      %32 = vector.broadcast %cst_28 : f32 to vector<8x1xf32>
      %33 = arith.maximumf %29, %32 : vector<8x1xf32>
      %34 = arith.mulf %31, %33 : vector<8x1xf32>
      %35 = math.rsqrt %34 : vector<8x1xf32>
      %36 = arith.mulf %23, %35 : vector<8x1xf32>
      %c0_29 = arith.constant 0 : index
      %c0_30 = arith.constant 0 : index
      %37 = vector.load %arg5[%c0_29, %c0_30] : memref<8x1xf32, #tpu.memory_space<vmem>>, vector<8x1xf32>
      %38 = arith.subf %36, %37 : vector<8x1xf32>
      %39 = arith.mulf %38, %38 : vector<8x1xf32>
      %40 = tpu.iota {dimensions = array<i32: 1>} : vector<8x128xi32>
      %c0_i32_31 = arith.constant 0 : i32
      %41 = vector.broadcast %c0_i32_31 : i32 to vector<8x128xi32>
      %42 = arith.cmpi eq, %40, %41 : vector<8x128xi32>
      %c1_i32_32 = arith.constant 1 : i32
      %43 = vector.broadcast %c1_i32_32 : i32 to vector<8x128xi32>
      %44 = arith.cmpi eq, %40, %43 : vector<8x128xi32>
      %cst_33 = arith.constant 0.000000e+00 : f32
      %45 = vector.shape_cast %39 : vector<8x1xf32> to vector<8x1xf32>
      %46 = vector.broadcast %45 : vector<8x1xf32> to vector<8x128xf32>
      %47 = vector.broadcast %cst_33 : f32 to vector<8x128xf32>
      %48 = arith.select %44, %46, %47 : vector<8x128xi1>, vector<8x128xf32>
      %49 = vector.shape_cast %36 : vector<8x1xf32> to vector<8x1xf32>
      %50 = vector.broadcast %49 : vector<8x1xf32> to vector<8x128xf32>
      %51 = arith.select %42, %50, %48 : vector<8x128xi1>, vector<8x128xf32>
      %c0_34 = arith.constant 0 : index
      %c0_35 = arith.constant 0 : index
      %52 = vector.load %arg8[%c0_34, %c0_35] : memref<8x128xf32, #tpu.memory_space<vmem>>, vector<8x128xf32>
      tpu.vector_store %arg8[%c0_34, %c0_35], %51 {strides = array<i32>} : memref<8x128xf32, #tpu.memory_space<vmem>>, vector<8x128xf32>,
    } else {
    }
    return
  }
  func.func @transform_0(%arg0: i32, %arg1: i32) -> (i32, i32) {
    %c0_i32 = arith.constant 0 : i32
    return %arg0, %arg1 : i32, i32
  }
  func.func @transform_1(%arg0: i32, %arg1: i32) -> (i32, i32) {
    %c0_i32 = arith.constant 0 : i32
    return %arg0, %arg1 : i32, i32
  }
  func.func @transform_2(%arg0: i32, %arg1: i32) -> (i32, i32) {
    %c0_i32 = arith.constant 0 : i32
    %c0_i32_0 = arith.constant 0 : i32
    return %arg1, %c0_i32 : i32, i32
  }
  func.func @transform_3(%arg0: i32, %arg1: i32) -> (i32, i32) {
    %c0_i32 = arith.constant 0 : i32
    %c0_i32_0 = arith.constant 0 : i32
    return %arg0, %c0_i32 : i32, i32
  }
  func.func @transform_4(%arg0: i32, %arg1: i32) -> (i32, i32) {
    %c0_i32 = arith.constant 0 : i32
    %c0_i32_0 = arith.constant 0 : i32
    return %arg0, %c0_i32 : i32, i32
  }
  func.func @transform_5(%arg0: i32, %arg1: i32) -> (i32, i32) {
    %c0_i32 = arith.constant 0 : i32
    %c0_i32_0 = arith.constant 0 : i32
    return %arg0, %c0_i32 : i32, i32
  }
  func.func @transform_6(%arg0: i32, %arg1: i32) -> (i32, i32) {
    %c0_i32 = arith.constant 0 : i32
    %c0_i32_0 = arith.constant 0 : i32
    return %arg0, %c0_i32 : i32, i32
  }
}

</mosaic_0001>

<bundles_post_ra>
// kernel: fused_features_and_score.1
= control target key start
LH: loop header
LB: loop body
LE: loop exit
PB: predicated region body
PF: predicated region fallthrough
CT: control target
= control target key end

     0   :  { %12 = vsyncpa [#allocation5], 0  ;;  %s1597_s0 = inlined_call_operand.vmem [shape: bf16[8,1024], index: 0, kind: input, shape index: {}]   ;;  %s1598_s1 = inlined_call_operand.vmem [shape: bf16[8,1024], index: 1, kind: input, shape index: {}]   ;;  %s1599_s2 = inlined_call_operand.vmem [shape: bf16[1024,128], index: 2, kind: input, shape index: {}]   ;;  %s1600_s3 = inlined_call_operand.vmem [shape: f32[8,1], index: 3, kind: input, shape index: {}]   ;;  %s1601_s4 = inlined_call_operand.hbm [shape: f32[8,128], index: 4, kind: output, shape index: {0}]   ;;  %s1602_s5 = inlined_call_operand.hbm [shape: f32[8,128], index: 5, kind: output, shape index: {1}]   ;;  %s1603_s6 = inlined_call_operand.vmem [shape: f32[8,128], index: 6, kind: output, shape index: {2}]  }
   0x1   :  { %13 = vsyncpa [#allocation7], 0  ;;  %s1377_s21 = smov 0   ;;  %s1379_s22 = smov 0  }
   0x2   :  { %s1381_s23 = smov 0  }
   0x3 LB: > { %s1022_s24 = sadd.s32 4294967295, %s1336_s23   ;;  %s28_s25 = sadd.s32 1, %s1332_s22  ;;  %s1336_s23 = sphi %s1381_s23, %s19_s23   ;;  %s1332_s22 = sphi %s1379_s22, %s1606_s22   ;;  %s1328_s21 = sphi %s1377_s21, %s1605_s21  }
   0x4   : > { %p29_p0 = scmp.ge.s32.totalorder %s28_s25, 2  ;;  %p1026_p1 = scmp.ge.s32.totalorder %s1336_s23, 1 }
   0x5   : > { %p275_p2 = scmp.lt.s32.totalorder %s1336_s23, 3 }
   0x6   : > { %s1608_s25 = smov (%p29_p0, %s28_s25), 0 }
   0x7   : > { %p276_p3 = pnand %p1026_p1, %p275_p2 }
   0x8   : > { %s1027_s26 = sshll.u32 (!%p276_p3), %s1328_s21, 2  ;;  %s1031_s27 = sshll.u32 (!%p276_p3), %s1328_s21, 6 }
   0x9   : > { %279 = sbr.rel (%p276_p3) target bundleno = 664 (0x298), region = 36  ;;  %p329_p4 = scmp.lt.s32.totalorder (!%p276_p3), %s1027_s26, 7 }
   0xa   : > { %p347_p5 = scmp.lt.s32.totalorder (!%p276_p3), %s1031_s27, 127  ;;  %p1033_p6 = scmp.ne.s32.totalorder (!%p276_p3), %s1328_s21, 0 }
  0x10   : > { %s1610_s26 = smov (!%p329_p4, %s1027_s26), 7  ;;  %s1612_s27 = smov (!%p347_p5, %s1031_s27), 127 }
  0x11   : > { %s1028_s28 = sshll.u32 %s1610_s26, 2  ;;  %s1032_s11 = sshll.u32 %s1612_s27, 2  ;;  %v1338_v0 = vmov (!%p1033_p6), 0.0  }
  0x12   : > { %s1403_s7 = scalar_lea.vmem %s1597_s0, %s1028_s28  ;;  %s1408_s10 = scalar_lea.vmem %s1598_s1, %s1028_s28  ;;  %365 = vst [vmem:[#allocation2] sm:$0xff] (!%p1033_p6), %v1338_v0  ;;  %366 = vst [vmem:[#allocation3] sm:$0xff] (!%p1033_p6), %v1338_v0 }
  0x13   : > { %s1413_s14 = scalar_lea.vmem %s1599_s2, %s1032_s11  ;;  %364 = sbr.rel (%p1033_p6) target bundleno = 26 (0x1a), region = 40 }
  0x1a PF: > { %v1417_v1 = vld [vmem:[%s1413_s14 + $0x40] sm:$0xff]   ;;  %v1432_v5 = vld [vmem:[%s1413_s14 + $0x48] sm:$0xff]   ;;  %v1448_v9 = vld [vmem:[%s1413_s14 + $0x50] sm:$0xff]   ;;  %p1074_p7 = scmp.ne.s32.totalorder %s1328_s21, 1 }
  0x1b   : > { %v1420_v2 = vld [vmem:[%s1413_s14 + $0xc0] sm:$0xff]   ;;  %1082 = vmatprep.subr.bf16.mxu0 %v1417_v1  ;;  %v1436_v6 = vld [vmem:[%s1413_s14 + $0xc8] sm:$0xff]   ;;  %v1452_v10 = vld [vmem:[%s1413_s14 + $0xd0] sm:$0xff]  }
  0x1c   : > { %v1424_v3 = vld [vmem:[%s1413_s14] sm:$0xff]   ;;  %1104 = vmatprep.subr.bf16.mxu1 %v1420_v2  ;;  %v1440_v7 = vld [vmem:[%s1413_s14 + $0x8] sm:$0xff]   ;;  %v1456_v11 = vld [vmem:[%s1413_s14 + $0x10] sm:$0xff]  }
  0x1d   : > { %v1428_v4 = vld [vmem:[%s1413_s14 + $0x80] sm:$0xff]   ;;  %1083 = vmatpush3.bf16.msra.mxu0 %v1424_v3  ;;  %v1444_v8 = vld [vmem:[%s1413_s14 + $0x88] sm:$0xff]   ;;  %v1460_v12 = vld [vmem:[%s1413_s14 + $0x90] sm:$0xff]  }
  0x1e   : > { %1105 = vmatpush3.bf16.msra.mxu1 %v1428_v4  ;;  %1084 = vmatprep.subr.bf16.mxu0 %v1432_v5  ;;  %v1464_v13 = vld [vmem:[%s1413_s14 + $0x58] sm:$0xff]   ;;  %v1480_v17 = vld [vmem:[%s1413_s14 + $0x60] sm:$0xff]   ;;  %v1230_v21 = vld [vmem:[%s1413_s14 + $0x68] sm:$0xff]  }
  0x1f   : > { %1106 = vmatprep.subr.bf16.mxu1 %v1436_v6  ;;  %v1468_v14 = vld [vmem:[%s1413_s14 + $0xd8] sm:$0xff]   ;;  %v1484_v18 = vld [vmem:[%s1413_s14 + $0xe0] sm:$0xff]   ;;  %v1231_v22 = vld [vmem:[%s1413_s14 + $0xe8] sm:$0xff]  }
  0x20   : > { %v1472_v15 = vld [vmem:[%s1413_s14 + $0x18] sm:$0xff]   ;;  %v1228_v19 = vld [vmem:[%s1413_s14 + $0x20] sm:$0xff]   ;;  %v1232_v23 = vld [vmem:[%s1413_s14 + $0x28] sm:$0xff]  }
  0x21   : > { %1085 = vmatpush3.bf16.msra.mxu0 %v1440_v7  ;;  %v1476_v16 = vld [vmem:[%s1413_s14 + $0x98] sm:$0xff]   ;;  %v1229_v20 = vld [vmem:[%s1413_s14 + $0xa0] sm:$0xff]   ;;  %v1233_v24 = vld [vmem:[%s1413_s14 + $0xa8] sm:$0xff]  }
  0x22   : > { %1107 = vmatpush3.bf16.msra.mxu1 %v1444_v8  ;;  %1086 = vmatprep.subr.bf16.mxu0 %v1448_v9  ;;  %v1234_v25 = vld [vmem:[%s1413_s14 + $0x70] sm:$0xff]   ;;  %v1238_v29 = vld [vmem:[%s1413_s14 + $0x78] sm:$0xff]   ;;  %v432_v33 = vld [vmem:[%s1403_s7] sm:$0xff] }
  0x23   : > { %1108 = vmatprep.subr.bf16.mxu1 %v1452_v10  ;;  %v1235_v26 = vld [vmem:[%s1413_s14 + $0xf0] sm:$0xff]   ;;  %v1239_v30 = vld [vmem:[%s1413_s14 + $0xf8] sm:$0xff]   ;;  %v433_v34 = vld [vmem:[%s1403_s7 + $0x8] sm:$0xff]  ;;  %v1034_v36 = vcombine.low %v432_v33, %v432_v33  ;;  %v1035_v37 = vcombine.high %v432_v33, %v432_v33 }
  0x24   : > { %v1236_v27 = vld [vmem:[%s1413_s14 + $0x30] sm:$0xff]   ;;  %v1240_v31 = vld [vmem:[%s1413_s14 + $0x38] sm:$0xff]   ;;  %v723_v35 = vld [vmem:[%s1408_s10] sm:$0xff]  ;;  %v1036_v38 = vcombine.low %v433_v34, %v433_v34  ;;  %v1037_v39 = vcombine.high %v433_v34, %v433_v34 }
  0x25   : > { %1087 = vmatpush3.bf16.msra.mxu0 %v1456_v11  ;;  %v1237_v28 = vld [vmem:[%s1413_s14 + $0xb0] sm:$0xff]   ;;  %v1241_v32 = vld [vmem:[%s1413_s14 + $0xb8] sm:$0xff]   ;;  %v724_v40 = vld [vmem:[%s1408_s10 + $0x8] sm:$0xff]  ;;  %672 = vmatprep.mubr.bf16.mxu0 %v1035_v37  ;;  %v1071_v41 = vcombine.high %v723_v35, %v723_v35  ;;  %v1070_v43 = vcombine.low %v723_v35, %v723_v35 }
  0x26   : > { %1109 = vmatpush3.bf16.msra.mxu1 %v1460_v12  ;;  %1088 = vmatprep.subr.bf16.mxu0 %v1464_v13  ;;  %v1073_v42 = vcombine.high %v724_v40, %v724_v40  ;;  %v1072_v44 = vcombine.low %v724_v40, %v724_v40  ;;  %v431_v53 = vld [vmem:[#allocation2] sm:$0xff] }
  0x27   : > { %1110 = vmatprep.subr.bf16.mxu1 %v1468_v14  ;;  %712 = vmatprep.mubr.bf16.mxu1 %v1037_v39 }
  0x29   : > { %1089 = vmatpush3.bf16.msra.mxu0 %v1472_v15 }
  0x2a   : > { %1111 = vmatpush3.bf16.msra.mxu1 %v1476_v16  ;;  %1090 = vmatprep.subr.bf16.mxu0 %v1480_v17 }
  0x2b   : > { %1112 = vmatprep.subr.bf16.mxu1 %v1484_v18 }
  0x2d   : > { %1091 = vmatpush3.bf16.msra.mxu0 %v1228_v19 }
  0x2e   : > { %1113 = vmatpush3.bf16.msra.mxu1 %v1229_v20  ;;  %1092 = vmatprep.subr.bf16.mxu0 %v1230_v21 }
  0x2f   : > { %1114 = vmatprep.subr.bf16.mxu1 %v1231_v22 }
  0x31   : > { %1093 = vmatpush3.bf16.msra.mxu0 %v1232_v23 }
  0x32   : > { %1115 = vmatpush3.bf16.msra.mxu1 %v1233_v24  ;;  %1094 = vmatprep.subr.bf16.mxu0 %v1234_v25 }
  0x33   : > { %1116 = vmatprep.subr.bf16.mxu1 %v1235_v26 }
  0x35   : > { %1095 = vmatpush3.bf16.msra.mxu0 %v1236_v27 }
  0x36   : > { %1117 = vmatpush3.bf16.msra.mxu1 %v1237_v28  ;;  %1096 = vmatprep.subr.bf16.mxu0 %v1238_v29 }
  0x37   : > { %1118 = vmatprep.subr.bf16.mxu1 %v1239_v30 }
  0x39   : > { %1097 = vmatpush3.bf16.msra.mxu0 %v1240_v31 }
  0x3a   : > { %1119 = vmatpush3.bf16.msra.mxu1 %v1241_v32  ;;  %1126 = vmatprep.subr.bf16.mxu0 %v1417_v1 }
  0x3b   : > { %1148 = vmatprep.subr.bf16.mxu1 %v1420_v2  ;;  %v722_v2 = vld [vmem:[#allocation3] sm:$0xff] }
  0x3c   : > { %673 = vmatmul.mubr.bf16.vlgmr.msra.gmra.mrb[0].mxu0 %v1034_v36 }
  0x3d   : > { %713 = vmatmul.mubr.bf16.vlgmr.msra.gmra.mrb[0].mxu1 %v1036_v38  ;;  %1127 = vmatpush3.bf16.msra.mxu0 %v1424_v3 }
  0x3e   : > { %1149 = vmatpush3.bf16.msra.mxu1 %v1428_v4  ;;  %1128 = vmatprep.subr.bf16.mxu0 %v1432_v5 }
  0x3f   : > { %1150 = vmatprep.subr.bf16.mxu1 %v1436_v6  ;;  %771 = vmatprep.mubr.bf16.mxu0 %v1071_v41 }
  0x40   : > { %811 = vmatprep.mubr.bf16.mxu1 %v1073_v42 }
  0x41   : > { %1129 = vmatpush3.bf16.msra.mxu0 %v1440_v7 }
  0x42   : > { %1151 = vmatpush3.bf16.msra.mxu1 %v1444_v8  ;;  %1130 = vmatprep.subr.bf16.mxu0 %v1448_v9 }
  0x43   : > { %1152 = vmatprep.subr.bf16.mxu1 %v1452_v10 }
  0x45   : > { %1131 = vmatpush3.bf16.msra.mxu0 %v1456_v11 }
  0x46   : > { %1153 = vmatpush3.bf16.msra.mxu1 %v1460_v12  ;;  %1132 = vmatprep.subr.bf16.mxu0 %v1464_v13  ;;  %v1339_v12 = vmov (!%p1074_p7), 0  }
  0x47   : > { %1154 = vmatprep.subr.bf16.mxu1 %v1468_v14  ;;  %1250 = vset.pattern.permute.xlu1 (!%p1074_p7), %v1339_v12 }
  0x48   : > { %1251 = vset.pattern.permute.xlu0 (!%p1074_p7), %v1339_v12 }
  0x49   : > { %1133 = vmatpush3.bf16.msra.mxu0 %v1472_v15 }
  0x4a   : > { %1155 = vmatpush3.bf16.msra.mxu1 %v1476_v16  ;;  %1134 = vmatprep.subr.bf16.mxu0 %v1480_v17 }
  0x4b   : > { %1156 = vmatprep.subr.bf16.mxu1 %v1484_v18 }
  0x4d   : > { %1135 = vmatpush3.bf16.msra.mxu0 %v1228_v19 }
  0x4e   : > { %1157 = vmatpush3.bf16.msra.mxu1 %v1229_v20  ;;  %1136 = vmatprep.subr.bf16.mxu0 %v1230_v21  ;;  %v843_v20 = vld [vmem:[%s1600_s3] sm:$0xff] (!%p1074_p7) }
  0x4f   : > { %1158 = vmatprep.subr.bf16.mxu1 %v1231_v22 }
  0x51   : > { %1137 = vmatpush3.bf16.msra.mxu0 %v1232_v23 }
  0x52   : > { %1159 = vmatpush3.bf16.msra.mxu1 %v1233_v24  ;;  %1138 = vmatprep.subr.bf16.mxu0 %v1234_v25  ;;  %v846_v24 = vlaneseq (!%p1074_p7) }
  0x53   : > { %1160 = vmatprep.subr.bf16.mxu1 %v1235_v26 }
  0x54   : > { %v847_v25 = vand.u32 (!%p1074_p7), 127, %v846_v24 }
  0x55   : > { %1139 = vmatpush3.bf16.msra.mxu0 %v1236_v27 }
  0x56   : > { %1161 = vmatpush3.bf16.msra.mxu1 %v1237_v28  ;;  %1140 = vmatprep.subr.bf16.mxu0 %v1238_v29  ;;  %vm849_vm0 = vcmp.eq.s32.totalorder (!%p1074_p7), %v847_v25, 1  ;;  %vm848_vm1 = vcmp.eq.s32.totalorder (!%p1074_p7), %v847_v25, 0 }
  0x57   : > { %1162 = vmatprep.subr.bf16.mxu1 %v1239_v30 }
  0x59   : > { %1141 = vmatpush3.bf16.msra.mxu0 %v1240_v31 }
  0x5a   : > { %1163 = vmatpush3.bf16.msra.mxu1 %v1241_v32 }
  0x5c   : > { %772 = vmatmul.mubr.bf16.vlgmr.msra.gmra.mrb[4].mxu0 %v1070_v43 }
  0x5d   : > { %812 = vmatmul.mubr.bf16.vlgmr.msra.gmra.mrb[4].mxu1 %v1072_v44 }
 0x10f   : > { %v1098_v45 = vpop.f32.mrb[0].mxu0 }
 0x110   : > { %v1120_v46 = vpop.f32.mrb[0].mxu1  ;;  %v1099_v47 = vpop.f32.mrb[1].mxu0 }
 0x111   : > { %v1121_v48 = vpop.f32.mrb[1].mxu1  ;;  %v1100_v49 = vadd.f32 %v1099_v47, %v1098_v45  ;;  %v1101_v51 = vpop.f32.mrb[2].mxu0 }
 0x112   : > { %v1122_v50 = vadd.f32 %v1121_v48, %v1120_v46  ;;  %v1123_v52 = vpop.f32.mrb[2].mxu1  ;;  %v1102_v54 = vpop.f32.mrb[3].mxu0 }
 0x113   : > { %v1124_v55 = vpop.f32.mrb[3].mxu1 }
 0x114   : > { %v715_v56 = vadd.f32 %v1122_v50, %v1100_v49 }
 0x116   : > { %v720_v57 = vadd.f32 %v715_v56, %v431_v53 }
 0x118   : > { %721 = vst [vmem:[#allocation2] sm:$0xff] %v720_v57 }
 0x11f   : > { %v825_v7 = vld [vmem:[#allocation2] sm:$0xff] (!%p1074_p7) }
 0x120   : > { %v832_v9 = vmul.f32 (!%p1074_p7), %v825_v7, %v825_v7  ;;  %827 = vst [vmem:[#allocation4] sm:$0xff] (!%p1074_p7), %v825_v7 }
 0x122   : > { %833 = vadd.xlane.f32.xlu0 (!%p1074_p7), %v832_v9 }
 0x12f   : > { %v1142_v58 = vpop.f32.mrb[4].mxu0 }
 0x130   : > { %v1164_v59 = vpop.f32.mrb[4].mxu1  ;;  %v1143_v60 = vpop.f32.mrb[5].mxu0 }
 0x131   : > { %v1165_v61 = vpop.f32.mrb[5].mxu1  ;;  %v1144_v62 = vadd.f32 %v1143_v60, %v1142_v58  ;;  %v1145_v0 = vpop.f32.mrb[6].mxu0 }
 0x132   : > { %v1166_v63 = vadd.f32 %v1165_v61, %v1164_v59  ;;  %v1167_v1 = vpop.f32.mrb[6].mxu1  ;;  %v1146_v3 = vpop.f32.mrb[7].mxu0  ;;  %824 = sbr.rel (%p1074_p7) target bundleno = 616 (0x268), region = 44 }
 0x133   : > { %v1168_v4 = vpop.f32.mrb[7].mxu1 }
 0x134   : > { %v814_v5 = vadd.f32 %v1166_v63, %v1144_v62 }
 0x136   : > { %v819_v6 = vadd.f32 %v814_v5, %v722_v2 }
 0x138   : > { %820 = vst [vmem:[#allocation3] sm:$0xff] %v819_v6 }
 0x13f   : > { %v826_v8 = vld [vmem:[#allocation3] sm:$0xff] }
 0x140   : > { %828 = vst [vmem:[#allocation6] sm:$0xff] %v826_v8  ;;  %v829_v10 = vmul.f32 %v826_v8, %v825_v7  ;;  %v835_v11 = vmul.f32 %v826_v8, %v826_v8 }
 0x142   : > { %830 = vadd.xlane.f32.xlu1 %v829_v10  ;;  %836 = vadd.xlane.f32.xlu0 %v835_v11 }
 0x1af   : > { %v834_v13 = vpop.xlane.xlu0 %833 }
 0x1b0   : > { %v838_v15 = vmax.f32 %v834_v13, 1e-12 }
 0x1cf   : > { %v837_v14 = vpop.xlane.xlu0 %836  ;;  %v831_v18 = vpop.xlane.xlu1 %830 }
 0x1d0   : > { %v839_v16 = vmax.f32 %v837_v14, 1e-12 }
 0x1d2   : > { %v840_v17 = vmul.f32 %v839_v16, %v838_v15 }
 0x1d4   : > { %1252 = vrsqrt.f32 %v840_v17 }
 0x1de   : > { %v1253_v19 = vpop.eup %1252 }
 0x1df   : > { %v842_v21 = vmul.f32 %v1253_v19, %v831_v18 }
 0x1e1   : > { %v844_v22 = vsub.f32 %v842_v21, %v843_v20 }
 0x1e3   : > { %v845_v23 = vmul.f32 %v844_v22, %v844_v22 }
 0x1e5   : > { %852 = vperm.xlu1 %1250, %v845_v23  }
 0x264   : > { %v853_v26 = vpop.permute.xlu1 %852 }
 0x265   : > { %v855_v27 = vsel %vm849_vm0, %v853_v26, 0.0 }
 0x266   : > { %v856_v28 = vsel %vm848_vm1, %v842_v21, %v855_v27 }
 0x267   : > { %857 = vst [vmem:[%s1603_s6] sm:$0xff] %v856_v28 }
 0x268 PF: > { %p1533_p8 = scmp.eq.s32.totalorder %s1022_s24, 1  ;;  %s1340_s20 = smov [#allocation4]  }
 0x269   : > { %s871_s21 = sshll.u32 %s1340_s20, 4  ;;  %s1341_s26 = smov [#allocation6]   ;;  %s872_s21 = int_to_ptr.vmem [resolvable:$true] %s871_s21 }
 0x26a   : > { %s884_s27 = sshll.u32 %s1341_s26, 4  ;;  %s1254_s28 = scalar_lea.vmem %s872_s21, 128  ;;  %s1537_s27 = int_to_ptr.vmem [resolvable:$true] %s884_s27 }
 0x26b   : > { %p1255_p9 = scmp.ne.s32.totalorder %s872_s21, %s1254_s28  ;;  %p1261_p12 = scmp.lt.s32.totalorder %s872_s21, %s872_s21 }
 0x26c   : > { %p1262_p13 = scmp.lt.s32.totalorder %s1254_s28, %s1254_s28 }
 0x26d   : > { %p1256_p10 = pnand %p1255_p9, %p1533_p8 }
 0x26e   : > { %p1263_p0 = por %p1262_p13, %p1261_p12 }
 0x26f   : > { %p1257_p11 = pneg %p1256_p10 }
 0x271   : > { %p1264_p1 = pnand %p1263_p0, %p1257_p11 }
 0x273   : > { %1267 = shalt.err (!%p1264_p1)
}
 0x274   : > { %s1268_s30 = scalar_lea.hbm %s1601_s4, 128 }
 0x275   : > { %p1269_p2 = scmp.ne.s32.totalorder %s1601_s4, %s1268_s30  ;;  %p1274_p5 = scmp.lt.u32.totalorder %s1268_s30, %s1601_s4 }
 0x277   : > { %p1270_p3 = pnand %p1269_p2, %p1533_p8 }
 0x279   : > { %p1271_p4 = pneg %p1270_p3 }
 0x27b   : > { %p1276_p6 = pnand %p1274_p5, %p1271_p4 }
 0x27d   : > { %1279 = shalt.err (!%p1276_p6)
}
 0x27e   : > { %1171 = dma.vmem_to_hbm [thread:$0]  (%p1533_p8), %s872_s21, 128, %s1601_s4, [#allocation5]  }
 0x27f   : > { %s1280_s13 = scalar_lea.vmem %s1537_s27, 128  ;;  %p1287_p11 = scmp.lt.s32.totalorder %s1537_s27, %s1537_s27 }
 0x280   : > { %p1281_p7 = scmp.ne.s32.totalorder %s1537_s27, %s1280_s13  ;;  %p1288_p12 = scmp.lt.s32.totalorder %s1280_s13, %s1280_s13 }
 0x282   : > { %p1282_p9 = pnand %p1281_p7, %p1533_p8  ;;  %p1289_p13 = por %p1288_p12, %p1287_p11 }
 0x284   : > { %p1283_p10 = pneg %p1282_p9 }
 0x286   : > { %p1290_p0 = pnand %p1289_p13, %p1283_p10 }
 0x288   : > { %1293 = shalt.err (!%p1290_p0)
}
 0x289   : > { %s1294_s16 = scalar_lea.hbm %s1602_s5, 128 }
 0x28a   : > { %p1295_p1 = scmp.ne.s32.totalorder %s1602_s5, %s1294_s16  ;;  %p1300_p4 = scmp.lt.u32.totalorder %s1294_s16, %s1602_s5 }
 0x28c   : > { %p1296_p2 = pnand %p1295_p1, %p1533_p8 }
 0x28e   : > { %p1297_p3 = pneg %p1296_p2 }
 0x290   : > { %p1302_p5 = pnand %p1300_p4, %p1297_p3 }
 0x292   : > { %1305 = shalt.err (!%p1302_p5)
}
 0x293   : > { %1173 = dma.vmem_to_hbm [thread:$0]  (%p1533_p8), %s1537_s27, 128, %s1602_s5, [#allocation7]  }
 0x294   : > { %1319 = dma.done.wait (%p1533_p8), [#allocation5], 128  }
 0x295   : > { %1321 = vsyncadd (%p1533_p8), [#allocation5], 4294967168 }
 0x296   : > { %1323 = dma.done.wait (%p1533_p8), [#allocation7], 128  }
 0x297   : > { %1325 = vsyncadd (%p1533_p8), [#allocation7], 4294967168 }
 0x298 PF: > { %s19_s23 = sadd.s32 1, %s1336_s23   ;;  %s1605_s21 = smov %s1332_s22 }
 0x299   : > { %p16_p6 = scmp.ge.s32.totalorder %s19_s23, 4   ;;  %s1606_s22 = smov %s1608_s25 }
 0x29b   :  { %18 = sbr.rel (!%p16_p6) target bundleno = 3 (0x3), region = 102 }
 0x2a2   :  { %911 = vsyncpa [#allocation5], 1 }
 0x2a3   :  { %913 = vsyncpa [#allocation5 + $0x1], 1 }
 0x2a4   :  { %914 = vsyncpa [#allocation7], 1 }

</bundles_post_ra>
